<compile_context>
chip_gen: v7x
topology: tpu7x:2x2x1
jax: 0.10.0
libtpu: 0.0.40
codegen_flags: <defaults>
</compile_context>

<pallas_src>
import functools
import math

import numpy as np
import jax
import jax.numpy as jnp
from jax import lax
from jax.experimental import pallas as pl
from jax.experimental.pallas import tpu as pltpu

BN_EPS = 1e-5
BN_SCALE = 1.0 / math.sqrt(1.0 + BN_EPS)  # eval BN: mean=0, var=1, gamma=1, beta=0

MXU_DTYPE = jnp.bfloat16
TILE_M = 512        # row tile for pointwise matmul kernels
TILE_M_DW = 256     # row tile for the 9-tap stride-2 depthwise kernel
TILE_H = 8          # spatial row tile for the fused InvertedResidual kernel
VMEM_LIMIT = 32 * 1024 * 1024


def _round_up(x, m):
    return ((x + m - 1) // m) * m


def _cparams(sem):
    return pltpu.CompilerParams(dimension_semantics=sem,
                                vmem_limit_bytes=VMEM_LIMIT)


def _apply_act(y, act):
    if act == "none":
        return y
    if act == "relu6":
        return jnp.clip(y, 0.0, 6.0)
    raise ValueError(act)


# --------------------------------------------------------------------------
# Pallas kernels
# --------------------------------------------------------------------------

def _mm_kernel(x_ref, w_ref, b_ref, o_ref, *, act):
    # (TM, K) @ (K, N) with fused bias + activation; BN scale pre-folded in w.
    y = jnp.dot(x_ref[...].astype(MXU_DTYPE), w_ref[...],
                preferred_element_type=jnp.float32) + b_ref[...]
    o_ref[...] = _apply_act(y, act)


def _att_kernel(g_ref, x_ref, wg_ref, bg_ref, wx_ref, bx_ref, wp_ref, bp_ref,
                o_ref):
    # Attention_block: x * sigmoid(psi(relu(Wg g + Wx x))); psi is a VPU/XLU
    # row-reduction (no MXU matmul with N=1), scalar psi bias sits in SMEM.
    g1 = jnp.dot(g_ref[...].astype(MXU_DTYPE), wg_ref[...],
                 preferred_element_type=jnp.float32) + bg_ref[...]
    x1 = jnp.dot(x_ref[...].astype(MXU_DTYPE), wx_ref[...],
                 preferred_element_type=jnp.float32) + bx_ref[...]
    h = jnp.maximum(g1 + x1, 0.0)
    p = jnp.sum(h * wp_ref[...], axis=-1, keepdims=True) + bp_ref[0, 0]
    p = jax.nn.sigmoid(p)
    o_ref[...] = x_ref[...] * p


def _dw_s2_proj_kernel(*refs):
    # Stride-2 depthwise 3x3 (9 pre-sliced taps) + folded BN + ReLU6 + fused
    # 1x1 projection.  refs: t0..t8, w_dw(9,C), b_dw(1,C), w_proj, b_proj, out
    taps = refs[0:9]
    w_dw_ref, b_dw_ref, w_proj_ref, b_proj_ref, o_ref = refs[9:14]
    w_dw = w_dw_ref[...]
    acc = taps[0][...] * w_dw[0]
    for k in range(1, 9):
        acc = acc + taps[k][...] * w_dw[k]
    hdw = jnp.clip(acc + b_dw_ref[...], 0.0, 6.0)
    o_ref[...] = jnp.dot(hdw.astype(MXU_DTYPE), w_proj_ref[...],
                         preferred_element_type=jnp.float32) + b_proj_ref[...]


def _invres_s1_kernel(*refs, n_in, has_expand, use_res, th, w, h):
    # Fused stride-1 InvertedResidual on one (batch, row-tile):
    #   expand 1x1 (split-K over n_in inputs) -> ReLU6 -> zero-pad mask
    #   -> depthwise 3x3 -> ReLU6 -> project 1x1 (+ residual).
    # The expanded hidden activation only ever lives in the VMEM scratch.
    pos = 0
    x_lo, x_hi = [], []
    for _ in range(n_in):
        x_lo.append(refs[pos])
        x_hi.append(refs[pos + 1])
        pos += 2
    if has_expand:
        w_exp = [refs[pos + k] for k in range(n_in)]
        pos += n_in
        b_exp_ref = refs[pos]
        pos += 1
    w_dw_ref, b_dw_ref, w_proj_ref, b_proj_ref = refs[pos:pos + 4]
    pos += 4
    o_ref = refs[pos]
    hid_ref = refs[pos + 1]

    wp2 = w + 2
    i = pl.program_id(1)

    # mask that zeroes the expanded hidden at spatially padded positions
    col = lax.broadcasted_iota(jnp.int32, (wp2, 1), 0)
    col_mask = jnp.logical_and(col >= 1, col <= w).astype(jnp.float32)
    if has_expand:
        b_exp = b_exp_ref[...]

    # ---- 1x1 expand (pointwise), including the 2 halo rows ----
    for r in range(th + 2):
        rows = []
        for k in range(n_in):
            rows.append(x_lo[k][0, r] if r < th else x_hi[k][0, r - th])
        if has_expand:
            acc = jnp.dot(rows[0].astype(MXU_DTYPE), w_exp[0][...],
                          preferred_element_type=jnp.float32)
            for k in range(1, n_in):
                acc = acc + jnp.dot(rows[k].astype(MXU_DTYPE), w_exp[k][...],
                                    preferred_element_type=jnp.float32)
            hrow = jnp.clip(acc + b_exp, 0.0, 6.0)
            grow = i * th + r
            valid = jnp.logical_and(grow >= 1, grow <= h).astype(jnp.float32)
            hid_ref[r] = hrow * (col_mask * valid)
        else:
            hid_ref[r] = rows[0]

    w_dw = w_dw_ref[...]      # (9, hidden) f32
    b_dw = b_dw_ref[...]      # (1, hidden)
    b_proj = b_proj_ref[...]  # (1, oup)

    # ---- depthwise 3x3 + ReLU6 + 1x1 project (+ residual), per output row ----
    for r in range(th):
        acc = None
        for dh in range(3):
            for dw in range(3):
                tap = hid_ref[r + dh, dw: dw + w, :] * w_dw[3 * dh + dw]
                acc = tap if acc is None else acc + tap
        hdw = jnp.clip(acc + b_dw, 0.0, 6.0)
        y = jnp.dot(hdw.astype(MXU_DTYPE), w_proj_ref[...],
                    preferred_element_type=jnp.float32) + b_proj
        if use_res:
            res = (x_lo[0][0, r + 1, 1:1 + w, :] if r + 1 < th
                   else x_hi[0][0, 0, 1:1 + w, :])
            y = y + res
        o_ref[0, r] = y


# --------------------------------------------------------------------------
# Pallas wrappers
# --------------------------------------------------------------------------

def _mm_call(x, w, b, act="none", tile_m=TILE_M):
    M, K = x.shape
    N = w.shape[1]
    tm = min(tile_m, _round_up(M, 8))
    grid = (pl.cdiv(M, tm),)
    return pl.pallas_call(
        functools.partial(_mm_kernel, act=act),
        grid=grid,
        in_specs=[pl.BlockSpec((tm, K), lambda i: (i, 0)),
                  pl.BlockSpec((K, N), lambda i: (0, 0)),
                  pl.BlockSpec((1, N), lambda i: (0, 0))],
        out_specs=pl.BlockSpec((tm, N), lambda i: (i, 0)),
        out_shape=jax.ShapeDtypeStruct((M, N), jnp.float32),
        compiler_params=_cparams(("parallel",)),
    )(x, w, b)


def conv1x1(x, w, b, act="none"):
    N, H, W, C = x.shape
    out = _mm_call(x.reshape(N * H * W, C), w, b, act=act)
    return out.reshape(N, H, W, w.shape[1])


def stem_conv(x, w, b):
    """3x3 stride-2 conv (pad 1) + folded BN + ReLU6 via im2col + tiled matmul."""
    # TODO(synk): build the im2col patches per-tile inside the kernel (VMEM)
    # instead of materializing the (M, 27) patch matrix in HBM.
    N, H, W, Cin = x.shape
    xp = jnp.pad(x, ((0, 0), (1, 1), (1, 1), (0, 0)))
    Ho = (H - 1) // 2 + 1
    Wo = (W - 1) // 2 + 1
    wins = []
    for dh in range(3):
        for dw in range(3):
            wins.append(xp[:, dh: dh + 2 * (Ho - 1) + 1: 2,
                           dw: dw + 2 * (Wo - 1) + 1: 2, :])
    patches = jnp.concatenate(wins, axis=-1).reshape(N * Ho * Wo, 9 * Cin)
    out = _mm_call(patches, w, b, act="relu6")
    return out.reshape(N, Ho, Wo, w.shape[1])


def conv_transpose2x2(x, p):
    """ConvTranspose2d(k=2, s=2) as a single lane-dense (Cin -> 4*Cout) matmul."""
    N, H, W, Cin = x.shape
    cout = p["w"].shape[1] // 4
    y = _mm_call(x.reshape(N * H * W, Cin), p["w"], p["b"], act="none")
    # TODO(synk): the 2x2 spatial interleave stays as plain-JAX reshape/transpose glue.
    y = y.reshape(N, H, W, 2, 2, cout).transpose(0, 1, 3, 2, 4, 5)
    return y.reshape(N, 2 * H, 2 * W, cout)


def attention(g, x, p):
    N, H, W, Fl = x.shape
    Fg = g.shape[-1]
    Fint = p["wg"].shape[1]
    M = N * H * W
    tm = min(TILE_M, _round_up(M, 8))
    grid = (pl.cdiv(M, tm),)
    out = pl.pallas_call(
        _att_kernel,
        grid=grid,
        in_specs=[pl.BlockSpec((tm, Fg), lambda i: (i, 0)),
                  pl.BlockSpec((tm, Fl), lambda i: (i, 0)),
                  pl.BlockSpec((Fg, Fint), lambda i: (0, 0)),
                  pl.BlockSpec((1, Fint), lambda i: (0, 0)),
                  pl.BlockSpec((Fl, Fint), lambda i: (0, 0)),
                  pl.BlockSpec((1, Fint), lambda i: (0, 0)),
                  pl.BlockSpec((1, Fint), lambda i: (0, 0)),
                  pl.BlockSpec(memory_space=pltpu.MemorySpace.SMEM)],
        out_specs=pl.BlockSpec((tm, Fl), lambda i: (i, 0)),
        out_shape=jax.ShapeDtypeStruct((M, Fl), jnp.float32),
        compiler_params=_cparams(("parallel",)),
    )(g.reshape(M, Fg), x.reshape(M, Fl),
      p["wg"], p["bg"], p["wx"], p["bx"], p["wp_row"], p["bp"])
    return out.reshape(N, H, W, Fl)


def invres_s1(xs, p):
    """Fused stride-1 InvertedResidual (expand -> dw3x3 -> project [+res])."""
    N, H, W = xs[0].shape[0], xs[0].shape[1], xs[0].shape[2]
    cins = tuple(int(a.shape[-1]) for a in xs)
    hidden, oup = p["hidden"], p["oup"]
    has_expand = p["expand"] != 1
    use_res = p["use_res"]

    TH = max(2, min(TILE_H, H))
    nt = pl.cdiv(H, TH)
    NB = nt + 1                       # row-blocks of the spatially padded input
    pad_bottom = NB * TH - (H + 1)    # top pad = 1, bottom pad >= 1
    Wp2 = W + 2

    xps = [jnp.pad(a, ((0, 0), (1, pad_bottom), (1, 1), (0, 0))) for a in xs]

    in_specs, args = [], []
    for xp, c in zip(xps, cins):
        in_specs.append(pl.BlockSpec((1, TH, Wp2, c), lambda n, i: (n, i, 0, 0)))
        in_specs.append(pl.BlockSpec((1, TH, Wp2, c), lambda n, i: (n, i + 1, 0, 0)))
        args += [xp, xp]

    def full_spec(a):
        return pl.BlockSpec(a.shape, lambda n, i: (0,) * a.ndim)

    if has_expand:
        for we in p["w_exp"]:
            in_specs.append(full_spec(we))
            args.append(we)
        in_specs.append(full_spec(p["b_exp"]))
        args.append(p["b_exp"])
    for name in ("w_dw", "b_dw", "w_proj", "b_proj"):
        in_specs.append(full_spec(p[name]))
        args.append(p[name])

    kernel = functools.partial(_invres_s1_kernel, n_in=len(xs),
                               has_expand=has_expand, use_res=use_res,
                               th=TH, w=W, h=H)
    Ho_pad = nt * TH
    out = pl.pallas_call(
        kernel,
        grid=(N, nt),
        in_specs=in_specs,
        out_specs=pl.BlockSpec((1, TH, W, oup), lambda n, i: (n, i, 0, 0)),
        out_shape=jax.ShapeDtypeStruct((N, Ho_pad, W, oup), jnp.float32),
        scratch_shapes=[pltpu.VMEM((TH + 2, Wp2, hidden), jnp.float32)],
        compiler_params=_cparams(("parallel", "parallel")),
    )(*args)
    return out[:, :H] if Ho_pad != H else out


def invres_s2(x, p):
    """Stride-2 InvertedResidual: tiled expand matmul + fused dw3x3/s2 + project."""
    N, H, W, Cin = x.shape
    hidden, oup = p["hidden"], p["oup"]
    h2 = _mm_call(x.reshape(N * H * W, Cin), p["w_exp"][0], p["b_exp"], act="relu6")
    hsp = h2.reshape(N, H, W, hidden)
    hp = jnp.pad(hsp, ((0, 0), (1, 1), (1, 1), (0, 0)))
    Ho = (H - 1) // 2 + 1
    Wo = (W - 1) // 2 + 1
    taps = []
    for dh in range(3):
        for dw in range(3):
            win = hp[:, dh: dh + 2 * (Ho - 1) + 1: 2,
                     dw: dw + 2 * (Wo - 1) + 1: 2, :]
            taps.append(win.reshape(N * Ho * Wo, hidden))
    M = N * Ho * Wo
    tm = min(TILE_M_DW, _round_up(M, 8))
    grid = (pl.cdiv(M, tm),)
    tap_spec = pl.BlockSpec((tm, hidden), lambda i: (i, 0))

    def fs(a):
        return pl.BlockSpec(a.shape, lambda i: (0,) * a.ndim)

    out = pl.pallas_call(
        _dw_s2_proj_kernel,
        grid=grid,
        in_specs=[tap_spec] * 9 + [fs(p["w_dw"]), fs(p["b_dw"]),
                                   fs(p["w_proj"]), fs(p["b_proj"])],
        out_specs=pl.BlockSpec((tm, oup), lambda i: (i, 0)),
        out_shape=jax.ShapeDtypeStruct((M, oup), jnp.float32),
        compiler_params=_cparams(("parallel",)),
    )(*taps, p["w_dw"], p["b_dw"], p["w_proj"], p["b_proj"])
    return out.reshape(N, Ho, Wo, oup)


def inverted_residual(xs, p):
    if p["stride"] == 1:
        return invres_s1(xs, p)
    assert len(xs) == 1
    return invres_s2(xs[0], p)


# --------------------------------------------------------------------------
# Parameter initialization (deterministic; BN scale folded, weights -> bf16)
# --------------------------------------------------------------------------

class _KeyGen:
    def __init__(self, seed):
        self._key = jax.random.PRNGKey(seed)

    def __call__(self):
        self._key, sub = jax.random.split(self._key)
        return sub


def _normal(kg, shape, std):
    return std * jax.random.normal(kg(), shape, dtype=jnp.float32)


def _init_invres(kg, inp, oup, stride, expand, split=None):
    hidden = inp * expand
    p = {"inp": inp, "oup": oup, "stride": stride, "expand": expand,
         "hidden": hidden,
         "use_res": (stride == 1 and inp == oup and split is None)}
    if expand != 1:
        w = _normal(kg, (inp, hidden), math.sqrt(2.0 / hidden)) * BN_SCALE
        if split is None:
            p["w_exp"] = (w.astype(MXU_DTYPE),)
        else:
            p["w_exp"] = (w[:split].astype(MXU_DTYPE), w[split:].astype(MXU_DTYPE))
        p["b_exp"] = jnp.zeros((1, hidden), jnp.float32)
    p["w_dw"] = _normal(kg, (9, hidden), math.sqrt(2.0 / (9 * hidden))) * BN_SCALE
    p["b_dw"] = jnp.zeros((1, hidden), jnp.float32)
    p["w_proj"] = (_normal(kg, (hidden, oup), math.sqrt(2.0 / oup))
                   * BN_SCALE).astype(MXU_DTYPE)
    p["b_proj"] = jnp.zeros((1, oup), jnp.float32)
    return p


def _init_att(kg, fg, fl, fint):
    wg = _normal(kg, (fg, fint), math.sqrt(2.0 / fint)) * BN_SCALE
    wx = _normal(kg, (fl, fint), math.sqrt(2.0 / fint)) * BN_SCALE
    wp = _normal(kg, (fint, 1), math.sqrt(2.0 / 1.0)) * BN_SCALE
    return {"wg": wg.astype(MXU_DTYPE), "bg": jnp.zeros((1, fint), jnp.float32),
            "wx": wx.astype(MXU_DTYPE), "bx": jnp.zeros((1, fint), jnp.float32),
            "wp_row": wp.reshape(1, fint),            # kept f32 (VPU reduction)
            "bp": jnp.zeros((1, 1), jnp.float32)}


def _init_dconv(kg, cin, cout):
    w = _normal(kg, (cin, 2, 2, cout), math.sqrt(2.0 / (4 * cout)))
    return {"w": w.reshape(cin, 4 * cout).astype(MXU_DTYPE),
            "b": jnp.zeros((1, 4 * cout), jnp.float32)}


def init_params(seed=1, class_num=1):
    kg = _KeyGen(seed)
    params = {}

    w0 = _normal(kg, (3, 3, 3, 32), math.sqrt(2.0 / (9 * 32))) * BN_SCALE
    params["stem_w"] = w0.reshape(27, 32).astype(MXU_DTYPE)
    params["stem_b"] = jnp.zeros((1, 32), jnp.float32)

    cfg = [(1, 16, 1, 1), (6, 24, 2, 2), (6, 32, 3, 2), (6, 64, 4, 2),
           (6, 96, 3, 1), (6, 160, 3, 2), (6, 320, 1, 1)]
    blocks = []
    in_ch = 32
    for t, c, n, s in cfg:
        for i in range(n):
            blocks.append(_init_invres(kg, in_ch, c, s if i == 0 else 1, t))
            in_ch = c
    params["blocks"] = blocks

    w18 = _normal(kg, (320, 1280), math.sqrt(2.0 / 1280)) * BN_SCALE
    params["f18_w"] = w18.astype(MXU_DTYPE)
    params["f18_b"] = jnp.zeros((1, 1280), jnp.float32)

    params["dconv1"] = _init_dconv(kg, 1280, 96)
    params["invres1"] = _init_invres(kg, 192, 96, 1, 6, split=96)
    params["dconv2"] = _init_dconv(kg, 96, 32)
    params["invres2"] = _init_invres(kg, 64, 32, 1, 6, split=32)
    params["dconv3"] = _init_dconv(kg, 32, 24)
    params["invres3"] = _init_invres(kg, 48, 24, 1, 6, split=24)
    params["dconv4"] = _init_dconv(kg, 24, 16)
    params["invres4"] = _init_invres(kg, 32, 16, 1, 6, split=16)

    params["att1"] = _init_att(kg, 16, 16, 8)
    params["att2"] = _init_att(kg, 24, 24, 12)
    params["att3"] = _init_att(kg, 32, 32, 16)
    params["att4"] = _init_att(kg, 96, 96, 48)

    # conv_last (16->3) and conv_score (3->class_num) composed into one matmul
    w_last = _normal(kg, (16, 3), math.sqrt(2.0 / 3))
    b_last = jnp.zeros((3,), jnp.float32)
    w_score = _normal(kg, (3, class_num), math.sqrt(2.0 / class_num))
    b_score = jnp.zeros((class_num,), jnp.float32)
    params["head_w"] = (w_last @ w_score).astype(MXU_DTYPE)
    params["head_b"] = (b_last @ w_score + b_score).reshape(1, class_num)
    return params


# --------------------------------------------------------------------------
# Forward pass
# --------------------------------------------------------------------------

def _interp_matrix(out_size, in_size):
    A = np.zeros((out_size, in_size), dtype=np.float32)
    if in_size == 1 or out_size == 1:
        A[:, 0] = 1.0
        return jnp.asarray(A)
    src = np.arange(out_size, dtype=np.float64) * (in_size - 1) / (out_size - 1)
    i0 = np.clip(np.floor(src).astype(np.int64), 0, in_size - 2)
    frac = src - i0
    A[np.arange(out_size), i0] = (1.0 - frac).astype(np.float32)
    A[np.arange(out_size), i0 + 1] = frac.astype(np.float32)
    return jnp.asarray(A)


def upsample_bilinear(x, out_h, out_w):
    # TODO(synk): final bilinear resize (align_corners=True) kept as plain-JAX
    # glue; it is negligible compute on the tiny class_num-channel logits.
    y = jnp.einsum("oh,nhwc->nowc", _interp_matrix(out_h, x.shape[1]), x)
    y = jnp.einsum("pw,nowc->nopc", _interp_matrix(out_w, x.shape[2]), y)
    return y


def mobile_unet_forward(params, x_nchw):
    out_h, out_w = int(x_nchw.shape[2]), int(x_nchw.shape[3])
    x = jnp.transpose(x_nchw, (0, 2, 3, 1)).astype(jnp.float32)  # -> NHWC

    # ---- MobileNetV2 encoder ----
    layer = stem_conv(x, params["stem_w"], params["stem_b"])
    feats = [layer]                       # feats[i] == base_model.features[i] output
    for bp in params["blocks"]:
        layer = inverted_residual([layer], bp)
        feats.append(layer)
    concat1, concat2, concat3, concat4 = feats[1], feats[3], feats[6], feats[13]

    layer = conv1x1(feats[17], params["f18_w"], params["f18_b"], act="relu6")

    # ---- Decoder (channel concat replaced by split-K inside the fused invres) ----
    d1 = conv_transpose2x2(layer, params["dconv1"])
    c4 = attention(d1, concat4, params["att4"])
    up1 = inverted_residual([c4, d1], params["invres1"])

    d2 = conv_transpose2x2(up1, params["dconv2"])
    c3 = attention(d2, concat3, params["att3"])
    up2 = inverted_residual([c3, d2], params["invres2"])

    d3 = conv_transpose2x2(up2, params["dconv3"])
    c2 = attention(d3, concat2, params["att2"])
    up3 = inverted_residual([c2, d3], params["invres3"])

    d4 = conv_transpose2x2(up3, params["dconv4"])
    c1 = attention(d4, concat1, params["att1"])
    up4 = inverted_residual([c1, d4], params["invres4"])

    y = conv1x1(up4, params["head_w"], params["head_b"], act="none")
    y = upsample_bilinear(y, out_h, out_w)
    return jnp.transpose(y, (0, 3, 1, 2))   # back to NCHW


if __name__ == "__main__":
    params = init_params(seed=1, class_num=1)
    x = jax.random.normal(jax.random.PRNGKey(0), (2, 3, 32, 32), dtype=jnp.float32)
    y = mobile_unet_forward(params, x)
    y = jax.block_until_ready(y)
    assert y.shape == (2, 1, 32, 32), y.shape
    assert bool(jnp.all(jnp.isfinite(y)))
    print("KERNEL_OK")
</pallas_src>

<mosaic_0001>
module attributes {stable_mosaic.version = 11 : i64} {
  func.func @_mm_kernel(%arg0: i32, %arg1: memref<512x27xf32, #tpu.memory_space<vmem>>, %arg2: memref<27x32xbf16, #tpu.memory_space<vmem>>, %arg3: memref<1x32xf32, #tpu.memory_space<vmem>>, %arg4: memref<512x32xf32, #tpu.memory_space<vmem>>) attributes {dimension_semantics = [#tpu.dimension_semantics<parallel>], iteration_bounds = array<i64: 1>, scalar_prefetch = 0 : i64, scratch_operands = 0 : i64, tpu.core_type = #tpu.core_type<tc>, window_params = [{transform_indices = @transform_0, window_bounds = array<i64: 512, 27>}, {pipeline_mode = #tpu.pipeline_mode<synchronous>, transform_indices = @transform_1, window_bounds = array<i64: 27, 32>}, {pipeline_mode = #tpu.pipeline_mode<synchronous>, transform_indices = @transform_2, window_bounds = array<i64: 1, 32>}, {transform_indices = @transform_3, window_bounds = array<i64: 512, 32>}]} {
    %c0 = arith.constant 0 : index
    %c0_0 = arith.constant 0 : index
    %0 = vector.load %arg1[%c0, %c0_0] : memref<512x27xf32, #tpu.memory_space<vmem>>, vector<512x27xf32>
    %1 = arith.truncf %0 : vector<512x27xf32> to vector<512x27xbf16>
    %c0_1 = arith.constant 0 : index
    %c0_2 = arith.constant 0 : index
    %2 = vector.load %arg2[%c0_1, %c0_2] : memref<27x32xbf16, #tpu.memory_space<vmem>>, vector<27x32xbf16>
    %cst = arith.constant dense<0.000000e+00> : vector<512x32xf32>
    %3 = tpu.matmul %1, %2, %cst {dimension_numbers = #tpu.dot_dimension_numbers<[1], [0], [0], [1], [0, 0, 1, 1], [], []>} : vector<512x27xbf16>, vector<27x32xbf16>, vector<512x32xf32> -> vector<512x32xf32>
    %c0_3 = arith.constant 0 : index
    %c0_4 = arith.constant 0 : index
    %4 = vector.load %arg3[%c0_3, %c0_4] : memref<1x32xf32, #tpu.memory_space<vmem>>, vector<1x32xf32>
    %5 = vector.broadcast %4 : vector<1x32xf32> to vector<512x32xf32>
    %6 = arith.addf %3, %5 : vector<512x32xf32>
    %cst_5 = arith.constant 0.000000e+00 : f32
    %cst_6 = arith.constant 6.000000e+00 : f32
    %7 = vector.broadcast %cst_5 : f32 to vector<512x32xf32>
    %8 = arith.maximumf %7, %6 : vector<512x32xf32>
    %9 = vector.broadcast %cst_6 : f32 to vector<512x32xf32>
    %10 = arith.minimumf %9, %8 : vector<512x32xf32>
    %c0_7 = arith.constant 0 : index
    %c0_8 = arith.constant 0 : index
    %11 = vector.load %arg4[%c0_7, %c0_8] : memref<512x32xf32, #tpu.memory_space<vmem>>, vector<512x32xf32>
    tpu.vector_store %arg4[%c0_7, %c0_8], %10 {strides = array<i32>} : memref<512x32xf32, #tpu.memory_space<vmem>>, vector<512x32xf32>,
    return
  }
  func.func @transform_0(%arg0: i32) -> (i32, i32) {
    %c0_i32 = arith.constant 0 : i32
    %c0_i32_0 = arith.constant 0 : i32
    return %arg0, %c0_i32 : i32, i32
  }
  func.func @transform_1(%arg0: i32) -> (i32, i32) {
    %c0_i32 = arith.constant 0 : i32
    %c0_i32_0 = arith.constant 0 : i32
    %c0_i32_1 = arith.constant 0 : i32
    return %c0_i32, %c0_i32_0 : i32, i32
  }
  func.func @transform_2(%arg0: i32) -> (i32, i32) {
    %c0_i32 = arith.constant 0 : i32
    %c0_i32_0 = arith.constant 0 : i32
    %c0_i32_1 = arith.constant 0 : i32
    return %c0_i32, %c0_i32_0 : i32, i32
  }
  func.func @transform_3(%arg0: i32) -> (i32, i32) {
    %c0_i32 = arith.constant 0 : i32
    %c0_i32_0 = arith.constant 0 : i32
    return %arg0, %c0_i32 : i32, i32
  }
}

</mosaic_0001>

<bundles_post_ra>
// kernel: tpu_custom_call.1
= control target key start
LH: loop header
LB: loop body
LE: loop exit
PB: predicated region body
PF: predicated region fallthrough
CT: control target
= control target key end

     0   :  { %vm230_vm0 = vcmask 1044480   ;;  %vm231_vm1 = vcmask 1045504   ;;  %v867_v1 = vmov 65535   ;;  %vm133_vm2 = vcmask 220160   ;;  %s1443_s1 = inlined_call_operand.vmem [shape: bf16[27,32], index: 1, kind: input, shape index: {}]   ;;  %s1444_s0 = inlined_call_operand.vmem [shape: f32[512,27], index: 0, kind: input, shape index: {}]   ;;  %s1445_s2 = inlined_call_operand.vmem [shape: f32[1,32], index: 2, kind: input, shape index: {}]   ;;  %s1446_s3 = inlined_call_operand.vmem [shape: f32[512,32], index: 3, kind: output, shape index: {}]  }
   0x1   :  { %v865_v0 = vld [vmem:[%s1443_s1] sm:$0xff]   ;;  %v232_v2 = vsel %vm230_vm0, 4294967295, %v867_v1  ;;  %v866_v3 = vld [vmem:[%s1443_s1 + $0x8] sm:$0x3f]   ;;  %v17_v11 = vld [vmem:[%s1444_s0 + $0x10] sm:$0xff]  ;;  %vm654_vm3 = vcmask 261120  }
   0x2   :  { %792 = vmatprep.subr.bf16.mxu0 %v865_v0  ;;  %860 = vmatprep.subr.bf16.mxu1 %v865_v0  ;;  %v233_v4 = vsel %vm231_vm1, %v232_v2, 0  ;;  %v15_v5 = vld [vmem:[%s1444_s0] sm:$0xff]  ;;  %v16_v6 = vld [vmem:[%s1444_s0 + $0x8] sm:$0xff]  ;;  %v18_v12 = vld [vmem:[%s1444_s0 + $0x18] sm:$0xff] }
   0x3   :  { %v47_v7 = vld [vmem:[%s1444_s0 + $0x100] sm:$0xff]  ;;  %793 = vmatpush3.bf16.msra.mxu0 %v865_v0  ;;  %862 = vmatpush3.bf16.msra.mxu1 %v865_v0  ;;  %v235_v8 = vand.u32 %v866_v3, %v233_v4  ;;  %v79_v9 = vpack.c.bf16 %v16_v6, %v15_v5  ;;  %v48_v10 = vld [vmem:[%s1444_s0 + $0x108] sm:$0xff]  ;;  %v49_v14 = vld [vmem:[%s1444_s0 + $0x110] sm:$0xff]  ;;  %v80_v20 = vpack.c.bf16 %v18_v12, %v17_v11 }
   0x4   :  { %v95_v13 = vpack.c.bf16 %v48_v10, %v47_v7  ;;  %v50_v15 = vld [vmem:[%s1444_s0 + $0x118] sm:$0xff]  ;;  %v19_v16 = vld [vmem:[%s1444_s0 + $0x20] sm:$0xff]  ;;  %v20_v17 = vld [vmem:[%s1444_s0 + $0x28] sm:$0xff] }
   0x5   :  { %794 = vmatprep.subr.bf16.mxu0 %v235_v8  ;;  %861 = vmatprep.subr.bf16.mxu1 %v235_v8  ;;  %v51_v18 = vld [vmem:[%s1444_s0 + $0x120] sm:$0xff]  ;;  %v52_v19 = vld [vmem:[%s1444_s0 + $0x128] sm:$0xff]  ;;  %v96_v21 = vpack.c.bf16 %v50_v15, %v49_v14  ;;  %v81_v22 = vpack.c.bf16 %v20_v17, %v19_v16  ;;  %v21_v24 = vld [vmem:[%s1444_s0 + $0x30] sm:$0xff] }
   0x6   :  { %796 = vmatprep.mubr.msk.bf16.mxu0 %vm133_vm2, %v79_v9  ;;  %828 = vmatprep.mubr.msk.bf16.mxu1 %vm133_vm2, %v95_v13  ;;  %v97_v23 = vpack.c.bf16 %v52_v19, %v51_v18  ;;  %v22_v25 = vld [vmem:[%s1444_s0 + $0x38] sm:$0xff]  ;;  %v53_v26 = vld [vmem:[%s1444_s0 + $0x130] sm:$0xff]  ;;  %v23_v28 = vld [vmem:[%s1444_s0 + $0x40] sm:$0xff] }
   0x7   :  { %795 = vmatpush3.bf16.msra.mxu0 %v235_v8  ;;  %863 = vmatpush3.bf16.msra.mxu1 %v235_v8  ;;  %v54_v27 = vld [vmem:[%s1444_s0 + $0x138] sm:$0xff]  ;;  %v24_v29 = vld [vmem:[%s1444_s0 + $0x48] sm:$0xff]  ;;  %v55_v30 = vld [vmem:[%s1444_s0 + $0x140] sm:$0xff]  ;;  %v82_v32 = vpack.c.bf16 %v22_v25, %v21_v24 }
   0x8   :  { %v56_v31 = vld [vmem:[%s1444_s0 + $0x148] sm:$0xff]  ;;  %v98_v33 = vpack.c.bf16 %v54_v27, %v53_v26  ;;  %v83_v34 = vpack.c.bf16 %v24_v29, %v23_v28  ;;  %v25_v36 = vld [vmem:[%s1444_s0 + $0x50] sm:$0xff]  ;;  %v26_v37 = vld [vmem:[%s1444_s0 + $0x58] sm:$0xff] }
   0x9   :  { %v99_v35 = vpack.c.bf16 %v56_v31, %v55_v30  ;;  %v57_v38 = vld [vmem:[%s1444_s0 + $0x150] sm:$0xff]  ;;  %v58_v39 = vld [vmem:[%s1444_s0 + $0x158] sm:$0xff]  ;;  %v27_v40 = vld [vmem:[%s1444_s0 + $0x60] sm:$0xff]  ;;  %v84_v44 = vpack.c.bf16 %v26_v37, %v25_v36 }
   0xa   :  { %797 = vmatmul.mubr.msk.bf16.vlgmr.msra.gmra.mrb[0].mxu0 %vm133_vm2, %v80_v20  ;;  %829 = vmatmul.mubr.msk.bf16.vlgmr.msra.gmra.mrb[0].mxu1 %vm133_vm2, %v96_v21  ;;  %v28_v41 = vld [vmem:[%s1444_s0 + $0x68] sm:$0xff]  ;;  %v59_v42 = vld [vmem:[%s1444_s0 + $0x160] sm:$0xff]  ;;  %v100_v45 = vpack.c.bf16 %v58_v39, %v57_v38  ;;  %v29_v48 = vld [vmem:[%s1444_s0 + $0x70] sm:$0xff] }
   0xb   :  { %800 = vmatprep.mubr.msk.bf16.mxu0 %vm133_vm2, %v81_v22  ;;  %832 = vmatprep.mubr.msk.bf16.mxu1 %vm133_vm2, %v97_v23  ;;  %v60_v43 = vld [vmem:[%s1444_s0 + $0x168] sm:$0xff]  ;;  %v85_v46 = vpack.c.bf16 %v28_v41, %v27_v40  ;;  %v30_v49 = vld [vmem:[%s1444_s0 + $0x78] sm:$0xff]  ;;  %v61_v50 = vld [vmem:[%s1444_s0 + $0x170] sm:$0xff] }
   0xc   :  { %v101_v47 = vpack.c.bf16 %v60_v43, %v59_v42  ;;  %v62_v51 = vld [vmem:[%s1444_s0 + $0x178] sm:$0xff]  ;;  %v31_v52 = vld [vmem:[%s1444_s0 + $0x80] sm:$0xff]  ;;  %v32_v53 = vld [vmem:[%s1444_s0 + $0x88] sm:$0xff]  ;;  %v86_v56 = vpack.c.bf16 %v30_v49, %v29_v48 }
   0xd   :  { %v63_v54 = vld [vmem:[%s1444_s0 + $0x180] sm:$0xff]  ;;  %v64_v55 = vld [vmem:[%s1444_s0 + $0x188] sm:$0xff]  ;;  %v102_v57 = vpack.c.bf16 %v62_v51, %v61_v50  ;;  %v87_v58 = vpack.c.bf16 %v32_v53, %v31_v52  ;;  %v33_v60 = vld [vmem:[%s1444_s0 + $0x90] sm:$0xff] }
   0xe   :  { %v103_v59 = vpack.c.bf16 %v64_v55, %v63_v54  ;;  %v34_v61 = vld [vmem:[%s1444_s0 + $0x98] sm:$0xff]  ;;  %v65_v62 = vld [vmem:[%s1444_s0 + $0x190] sm:$0xff]  ;;  %v35_v0 = vld [vmem:[%s1444_s0 + $0xa0] sm:$0xff] }
   0xf   :  { %v66_v63 = vld [vmem:[%s1444_s0 + $0x198] sm:$0xff]  ;;  %v36_v1 = vld [vmem:[%s1444_s0 + $0xa8] sm:$0xff]  ;;  %v67_v2 = vld [vmem:[%s1444_s0 + $0x1a0] sm:$0xff]  ;;  %v88_v4 = vpack.c.bf16 %v34_v61, %v33_v60 }
  0x10   :  { %v68_v3 = vld [vmem:[%s1444_s0 + $0x1a8] sm:$0xff]  ;;  %v104_v5 = vpack.c.bf16 %v66_v63, %v65_v62  ;;  %v89_v6 = vpack.c.bf16 %v36_v1, %v35_v0  ;;  %v37_v8 = vld [vmem:[%s1444_s0 + $0xb0] sm:$0xff]  ;;  %v38_v9 = vld [vmem:[%s1444_s0 + $0xb8] sm:$0xff] }
  0x11   :  { %v105_v7 = vpack.c.bf16 %v68_v3, %v67_v2  ;;  %v69_v10 = vld [vmem:[%s1444_s0 + $0x1b0] sm:$0xff]  ;;  %v70_v11 = vld [vmem:[%s1444_s0 + $0x1b8] sm:$0xff]  ;;  %v39_v12 = vld [vmem:[%s1444_s0 + $0xc0] sm:$0xff]  ;;  %v90_v16 = vpack.c.bf16 %v38_v9, %v37_v8 }
  0x12   :  { %801 = vmatmul.mubr.msk.bf16.gmra.mrb[4].mxu0 %vm133_vm2, %v82_v32  ;;  %833 = vmatmul.mubr.msk.bf16.gmra.mrb[4].mxu1 %vm133_vm2, %v98_v33  ;;  %v40_v13 = vld [vmem:[%s1444_s0 + $0xc8] sm:$0xff]  ;;  %v71_v14 = vld [vmem:[%s1444_s0 + $0x1c0] sm:$0xff]  ;;  %v106_v17 = vpack.c.bf16 %v70_v11, %v69_v10  ;;  %v41_v20 = vld [vmem:[%s1444_s0 + $0xd0] sm:$0xff] }
  0x13   :  { %804 = vmatprep.mubr.msk.bf16.mxu0 %vm133_vm2, %v83_v34  ;;  %836 = vmatprep.mubr.msk.bf16.mxu1 %vm133_vm2, %v99_v35  ;;  %v72_v15 = vld [vmem:[%s1444_s0 + $0x1c8] sm:$0xff]  ;;  %v91_v18 = vpack.c.bf16 %v40_v13, %v39_v12  ;;  %v42_v21 = vld [vmem:[%s1444_s0 + $0xd8] sm:$0xff]  ;;  %v73_v22 = vld [vmem:[%s1444_s0 + $0x1d0] sm:$0xff] }
  0x14   :  { %v107_v19 = vpack.c.bf16 %v72_v15, %v71_v14  ;;  %v74_v23 = vld [vmem:[%s1444_s0 + $0x1d8] sm:$0xff]  ;;  %v43_v24 = vld [vmem:[%s1444_s0 + $0xe0] sm:$0xff]  ;;  %v44_v25 = vld [vmem:[%s1444_s0 + $0xe8] sm:$0xff]  ;;  %v92_v28 = vpack.c.bf16 %v42_v21, %v41_v20 }
  0x15   :  { %v75_v26 = vld [vmem:[%s1444_s0 + $0x1e0] sm:$0xff]  ;;  %v76_v27 = vld [vmem:[%s1444_s0 + $0x1e8] sm:$0xff]  ;;  %v108_v29 = vpack.c.bf16 %v74_v23, %v73_v22  ;;  %v93_v30 = vpack.c.bf16 %v44_v25, %v43_v24  ;;  %v45_v32 = vld [vmem:[%s1444_s0 + $0xf0] sm:$0xff] }
  0x16   :  { %v109_v31 = vpack.c.bf16 %v76_v27, %v75_v26  ;;  %v46_v33 = vld [vmem:[%s1444_s0 + $0xf8] sm:$0xff]  ;;  %v77_v34 = vld [vmem:[%s1444_s0 + $0x1f0] sm:$0xff]  ;;  %v1121_v38 = vld [vmem:[%s1445_s2] ss:$0 sm:$0xff] }
  0x17   :  { %v78_v35 = vld [vmem:[%s1444_s0 + $0x1f8] sm:$0xff]  ;;  %v94_v36 = vpack.c.bf16 %v46_v33, %v45_v32 }
  0x18   :  { %v110_v37 = vpack.c.bf16 %v78_v35, %v77_v34 }
  0x1a   :  { %805 = vmatmul.mubr.msk.bf16.gmra.mrb[8].mxu0 %vm133_vm2, %v84_v44  ;;  %837 = vmatmul.mubr.msk.bf16.gmra.mrb[8].mxu1 %vm133_vm2, %v100_v45 }
  0x1b   :  { %808 = vmatprep.mubr.msk.bf16.mxu0 %vm133_vm2, %v85_v46  ;;  %840 = vmatprep.mubr.msk.bf16.mxu1 %vm133_vm2, %v101_v47 }
  0x22   :  { %809 = vmatmul.mubr.msk.bf16.gmra.mrb[12].mxu0 %vm133_vm2, %v86_v56  ;;  %841 = vmatmul.mubr.msk.bf16.gmra.mrb[12].mxu1 %vm133_vm2, %v102_v57 }
  0x23   :  { %812 = vmatprep.mubr.msk.bf16.mxu0 %vm133_vm2, %v87_v58  ;;  %844 = vmatprep.mubr.msk.bf16.mxu1 %vm133_vm2, %v103_v59 }
  0x2a   :  { %813 = vmatmul.mubr.msk.bf16.gmra.mrb[16].mxu0 %vm133_vm2, %v88_v4  ;;  %845 = vmatmul.mubr.msk.bf16.gmra.mrb[16].mxu1 %vm133_vm2, %v104_v5 }
  0x2b   :  { %816 = vmatprep.mubr.msk.bf16.mxu0 %vm133_vm2, %v89_v6  ;;  %848 = vmatprep.mubr.msk.bf16.mxu1 %vm133_vm2, %v105_v7 }
  0x32   :  { %817 = vmatmul.mubr.msk.bf16.gmra.mrb[20].mxu0 %vm133_vm2, %v90_v16  ;;  %849 = vmatmul.mubr.msk.bf16.gmra.mrb[20].mxu1 %vm133_vm2, %v106_v17 }
  0x33   :  { %820 = vmatprep.mubr.msk.bf16.mxu0 %vm133_vm2, %v91_v18  ;;  %852 = vmatprep.mubr.msk.bf16.mxu1 %vm133_vm2, %v107_v19 }
  0x3a   :  { %821 = vmatmul.mubr.msk.bf16.gmra.mrb[24].mxu0 %vm133_vm2, %v92_v28  ;;  %853 = vmatmul.mubr.msk.bf16.gmra.mrb[24].mxu1 %vm133_vm2, %v108_v29 }
  0x3b   :  { %824 = vmatprep.mubr.msk.bf16.mxu0 %vm133_vm2, %v93_v30  ;;  %856 = vmatprep.mubr.msk.bf16.mxu1 %vm133_vm2, %v109_v31 }
  0x42   :  { %825 = vmatmul.mubr.msk.bf16.gmra.mrb[28].mxu0 %vm133_vm2, %v94_v36  ;;  %857 = vmatmul.mubr.msk.bf16.gmra.mrb[28].mxu1 %vm133_vm2, %v110_v37 }
  0xdd   :  { %v798_v39 = vpop.f32.mrb[0].mxu0  ;;  %v830_v40 = vpop.f32.mrb[0].mxu1 }
  0xde   :  { %v280_v41 = vadd.f32 %v798_v39, %v1121_v38  ;;  %v408_v42 = vadd.f32 %v830_v40, %v1121_v38  ;;  %v271_v43 = vpop.f32.mrb[1].mxu0  ;;  %v399_v44 = vpop.f32.mrb[1].mxu1 }
  0xdf   :  { %v272_v45 = vadd.f32 %v1121_v38, %v271_v43  ;;  %v400_v46 = vadd.f32 %v1121_v38, %v399_v44  ;;  %v799_v47 = vpop.f32.mrb[2].mxu0  ;;  %v831_v48 = vpop.f32.mrb[2].mxu1 }
  0xe0   :  { %v528_v49 = vmax.f32 %v280_v41, 0.0  ;;  %v560_v50 = vmax.f32 %v408_v42, 0.0  ;;  %v283_v51 = vadd.f32 %v799_v47, %v1121_v38  ;;  %v411_v52 = vadd.f32 %v831_v48, %v1121_v38  ;;  %v274_v53 = vpop.f32.mrb[3].mxu0  ;;  %v402_v54 = vpop.f32.mrb[3].mxu1 }
  0xe1   :  { %v526_v55 = vmax.f32 %v272_v45, 0.0  ;;  %v558_v56 = vmax.f32 %v400_v46, 0.0  ;;  %v275_v57 = vadd.f32 %v1121_v38, %v274_v53  ;;  %v403_v58 = vadd.f32 %v1121_v38, %v402_v54 }
  0xe2   :  { %v592_v59 = vmin.f32 %v528_v49, 6.0  ;;  %v624_v60 = vmin.f32 %v560_v50, 6.0  ;;  %v529_v61 = vmax.f32 %v283_v51, 0.0  ;;  %v561_v62 = vmax.f32 %v411_v52, 0.0 }
  0xe3   :  { %v590_v63 = vmin.f32 %v526_v55, 6.0  ;;  %v622_v0 = vmin.f32 %v558_v56, 6.0  ;;  %v527_v1 = vmax.f32 %v275_v57, 0.0  ;;  %v559_v2 = vmax.f32 %v403_v58, 0.0 }
  0xe4   :  { %657 = vst.msk [vmem:[%s1446_s3 + $0x10] sm:$0xff] %vm654_vm3, %v592_v59  ;;  %689 = vst.msk [vmem:[%s1446_s3 + $0x110] sm:$0xff] %vm654_vm3, %v624_v60  ;;  %v593_v3 = vmin.f32 %v529_v61, 6.0  ;;  %v625_v4 = vmin.f32 %v561_v62, 6.0 }
  0xe5   :  { %655 = vst.msk [vmem:[%s1446_s3] sm:$0xff] %vm654_vm3, %v590_v63  ;;  %687 = vst.msk [vmem:[%s1446_s3 + $0x100] sm:$0xff] %vm654_vm3, %v622_v0  ;;  %v591_v5 = vmin.f32 %v527_v1, 6.0  ;;  %v623_v6 = vmin.f32 %v559_v2, 6.0  ;;  %v802_v7 = vpop.f32.mrb[4].mxu0  ;;  %v834_v8 = vpop.f32.mrb[4].mxu1 }
  0xe6   :  { %658 = vst.msk [vmem:[%s1446_s3 + $0x18] sm:$0xff] %vm654_vm3, %v593_v3  ;;  %690 = vst.msk [vmem:[%s1446_s3 + $0x118] sm:$0xff] %vm654_vm3, %v625_v4  ;;  %v296_v9 = vadd.f32 %v802_v7, %v1121_v38  ;;  %v424_v10 = vadd.f32 %v834_v8, %v1121_v38  ;;  %v287_v11 = vpop.f32.mrb[5].mxu0  ;;  %v415_v12 = vpop.f32.mrb[5].mxu1 }
  0xe7   :  { %656 = vst.msk [vmem:[%s1446_s3 + $0x8] sm:$0xff] %vm654_vm3, %v591_v5  ;;  %688 = vst.msk [vmem:[%s1446_s3 + $0x108] sm:$0xff] %vm654_vm3, %v623_v6  ;;  %v288_v13 = vadd.f32 %v1121_v38, %v287_v11  ;;  %v416_v14 = vadd.f32 %v1121_v38, %v415_v12  ;;  %v803_v15 = vpop.f32.mrb[6].mxu0  ;;  %v835_v16 = vpop.f32.mrb[6].mxu1 }
  0xe8   :  { %v532_v17 = vmax.f32 %v296_v9, 0.0  ;;  %v564_v18 = vmax.f32 %v424_v10, 0.0  ;;  %v299_v19 = vadd.f32 %v803_v15, %v1121_v38  ;;  %v427_v20 = vadd.f32 %v835_v16, %v1121_v38  ;;  %v290_v21 = vpop.f32.mrb[7].mxu0  ;;  %v418_v22 = vpop.f32.mrb[7].mxu1 }
  0xe9   :  { %v530_v23 = vmax.f32 %v288_v13, 0.0  ;;  %v562_v24 = vmax.f32 %v416_v14, 0.0  ;;  %v291_v25 = vadd.f32 %v1121_v38, %v290_v21  ;;  %v419_v26 = vadd.f32 %v1121_v38, %v418_v22 }
  0xea   :  { %v596_v27 = vmin.f32 %v532_v17, 6.0  ;;  %v628_v28 = vmin.f32 %v564_v18, 6.0  ;;  %v533_v29 = vmax.f32 %v299_v19, 0.0  ;;  %v565_v30 = vmax.f32 %v427_v20, 0.0 }
  0xeb   :  { %v594_v31 = vmin.f32 %v530_v23, 6.0  ;;  %v626_v32 = vmin.f32 %v562_v24, 6.0  ;;  %v531_v33 = vmax.f32 %v291_v25, 0.0  ;;  %v563_v34 = vmax.f32 %v419_v26, 0.0 }
  0xec   :  { %661 = vst.msk [vmem:[%s1446_s3 + $0x30] sm:$0xff] %vm654_vm3, %v596_v27  ;;  %693 = vst.msk [vmem:[%s1446_s3 + $0x130] sm:$0xff] %vm654_vm3, %v628_v28  ;;  %v597_v35 = vmin.f32 %v533_v29, 6.0  ;;  %v629_v36 = vmin.f32 %v565_v30, 6.0 }
  0xed   :  { %659 = vst.msk [vmem:[%s1446_s3 + $0x20] sm:$0xff] %vm654_vm3, %v594_v31  ;;  %691 = vst.msk [vmem:[%s1446_s3 + $0x120] sm:$0xff] %vm654_vm3, %v626_v32  ;;  %v595_v37 = vmin.f32 %v531_v33, 6.0  ;;  %v627_v39 = vmin.f32 %v563_v34, 6.0  ;;  %v806_v40 = vpop.f32.mrb[8].mxu0  ;;  %v838_v41 = vpop.f32.mrb[8].mxu1 }
  0xee   :  { %662 = vst.msk [vmem:[%s1446_s3 + $0x38] sm:$0xff] %vm654_vm3, %v597_v35  ;;  %694 = vst.msk [vmem:[%s1446_s3 + $0x138] sm:$0xff] %vm654_vm3, %v629_v36  ;;  %v312_v42 = vadd.f32 %v806_v40, %v1121_v38  ;;  %v440_v43 = vadd.f32 %v838_v41, %v1121_v38  ;;  %v303_v44 = vpop.f32.mrb[9].mxu0  ;;  %v431_v45 = vpop.f32.mrb[9].mxu1 }
  0xef   :  { %660 = vst.msk [vmem:[%s1446_s3 + $0x28] sm:$0xff] %vm654_vm3, %v595_v37  ;;  %692 = vst.msk [vmem:[%s1446_s3 + $0x128] sm:$0xff] %vm654_vm3, %v627_v39  ;;  %v304_v46 = vadd.f32 %v1121_v38, %v303_v44  ;;  %v432_v47 = vadd.f32 %v1121_v38, %v431_v45  ;;  %v807_v48 = vpop.f32.mrb[10].mxu0  ;;  %v839_v49 = vpop.f32.mrb[10].mxu1 }
  0xf0   :  { %v536_v50 = vmax.f32 %v312_v42, 0.0  ;;  %v568_v51 = vmax.f32 %v440_v43, 0.0  ;;  %v315_v52 = vadd.f32 %v807_v48, %v1121_v38  ;;  %v443_v53 = vadd.f32 %v839_v49, %v1121_v38  ;;  %v306_v54 = vpop.f32.mrb[11].mxu0  ;;  %v434_v55 = vpop.f32.mrb[11].mxu1 }
  0xf1   :  { %v534_v56 = vmax.f32 %v304_v46, 0.0  ;;  %v566_v57 = vmax.f32 %v432_v47, 0.0  ;;  %v307_v58 = vadd.f32 %v1121_v38, %v306_v54  ;;  %v435_v59 = vadd.f32 %v1121_v38, %v434_v55 }
  0xf2   :  { %v600_v60 = vmin.f32 %v536_v50, 6.0  ;;  %v632_v61 = vmin.f32 %v568_v51, 6.0  ;;  %v537_v62 = vmax.f32 %v315_v52, 0.0  ;;  %v569_v63 = vmax.f32 %v443_v53, 0.0 }
  0xf3   :  { %v598_v0 = vmin.f32 %v534_v56, 6.0  ;;  %v630_v1 = vmin.f32 %v566_v57, 6.0  ;;  %v535_v2 = vmax.f32 %v307_v58, 0.0  ;;  %v567_v3 = vmax.f32 %v435_v59, 0.0 }
  0xf4   :  { %665 = vst.msk [vmem:[%s1446_s3 + $0x50] sm:$0xff] %vm654_vm3, %v600_v60  ;;  %697 = vst.msk [vmem:[%s1446_s3 + $0x150] sm:$0xff] %vm654_vm3, %v632_v61  ;;  %v601_v4 = vmin.f32 %v537_v62, 6.0  ;;  %v633_v5 = vmin.f32 %v569_v63, 6.0 }
  0xf5   :  { %663 = vst.msk [vmem:[%s1446_s3 + $0x40] sm:$0xff] %vm654_vm3, %v598_v0  ;;  %695 = vst.msk [vmem:[%s1446_s3 + $0x140] sm:$0xff] %vm654_vm3, %v630_v1  ;;  %v599_v6 = vmin.f32 %v535_v2, 6.0  ;;  %v631_v7 = vmin.f32 %v567_v3, 6.0  ;;  %v810_v8 = vpop.f32.mrb[12].mxu0  ;;  %v842_v9 = vpop.f32.mrb[12].mxu1 }
  0xf6   :  { %666 = vst.msk [vmem:[%s1446_s3 + $0x58] sm:$0xff] %vm654_vm3, %v601_v4  ;;  %698 = vst.msk [vmem:[%s1446_s3 + $0x158] sm:$0xff] %vm654_vm3, %v633_v5  ;;  %v328_v10 = vadd.f32 %v810_v8, %v1121_v38  ;;  %v456_v11 = vadd.f32 %v842_v9, %v1121_v38  ;;  %v319_v12 = vpop.f32.mrb[13].mxu0  ;;  %v447_v13 = vpop.f32.mrb[13].mxu1 }
  0xf7   :  { %664 = vst.msk [vmem:[%s1446_s3 + $0x48] sm:$0xff] %vm654_vm3, %v599_v6  ;;  %696 = vst.msk [vmem:[%s1446_s3 + $0x148] sm:$0xff] %vm654_vm3, %v631_v7  ;;  %v320_v14 = vadd.f32 %v1121_v38, %v319_v12  ;;  %v448_v15 = vadd.f32 %v1121_v38, %v447_v13  ;;  %v811_v16 = vpop.f32.mrb[14].mxu0  ;;  %v843_v17 = vpop.f32.mrb[14].mxu1 }
  0xf8   :  { %v540_v18 = vmax.f32 %v328_v10, 0.0  ;;  %v572_v19 = vmax.f32 %v456_v11, 0.0  ;;  %v331_v20 = vadd.f32 %v811_v16, %v1121_v38  ;;  %v459_v21 = vadd.f32 %v843_v17, %v1121_v38  ;;  %v322_v22 = vpop.f32.mrb[15].mxu0  ;;  %v450_v23 = vpop.f32.mrb[15].mxu1 }
  0xf9   :  { %v538_v24 = vmax.f32 %v320_v14, 0.0  ;;  %v570_v25 = vmax.f32 %v448_v15, 0.0  ;;  %v323_v26 = vadd.f32 %v1121_v38, %v322_v22  ;;  %v451_v27 = vadd.f32 %v1121_v38, %v450_v23 }
  0xfa   :  { %v604_v28 = vmin.f32 %v540_v18, 6.0  ;;  %v636_v29 = vmin.f32 %v572_v19, 6.0  ;;  %v541_v30 = vmax.f32 %v331_v20, 0.0  ;;  %v573_v31 = vmax.f32 %v459_v21, 0.0 }
  0xfb   :  { %v602_v32 = vmin.f32 %v538_v24, 6.0  ;;  %v634_v33 = vmin.f32 %v570_v25, 6.0  ;;  %v539_v34 = vmax.f32 %v323_v26, 0.0  ;;  %v571_v35 = vmax.f32 %v451_v27, 0.0 }
  0xfc   :  { %669 = vst.msk [vmem:[%s1446_s3 + $0x70] sm:$0xff] %vm654_vm3, %v604_v28  ;;  %701 = vst.msk [vmem:[%s1446_s3 + $0x170] sm:$0xff] %vm654_vm3, %v636_v29  ;;  %v605_v36 = vmin.f32 %v541_v30, 6.0  ;;  %v637_v37 = vmin.f32 %v573_v31, 6.0 }
  0xfd   :  { %667 = vst.msk [vmem:[%s1446_s3 + $0x60] sm:$0xff] %vm654_vm3, %v602_v32  ;;  %699 = vst.msk [vmem:[%s1446_s3 + $0x160] sm:$0xff] %vm654_vm3, %v634_v33  ;;  %v603_v39 = vmin.f32 %v539_v34, 6.0  ;;  %v635_v40 = vmin.f32 %v571_v35, 6.0  ;;  %v814_v41 = vpop.f32.mrb[16].mxu0  ;;  %v846_v42 = vpop.f32.mrb[16].mxu1 }
  0xfe   :  { %670 = vst.msk [vmem:[%s1446_s3 + $0x78] sm:$0xff] %vm654_vm3, %v605_v36  ;;  %702 = vst.msk [vmem:[%s1446_s3 + $0x178] sm:$0xff] %vm654_vm3, %v637_v37  ;;  %v344_v43 = vadd.f32 %v814_v41, %v1121_v38  ;;  %v472_v44 = vadd.f32 %v846_v42, %v1121_v38  ;;  %v335_v45 = vpop.f32.mrb[17].mxu0  ;;  %v463_v46 = vpop.f32.mrb[17].mxu1 }
  0xff   :  { %668 = vst.msk [vmem:[%s1446_s3 + $0x68] sm:$0xff] %vm654_vm3, %v603_v39  ;;  %700 = vst.msk [vmem:[%s1446_s3 + $0x168] sm:$0xff] %vm654_vm3, %v635_v40  ;;  %v336_v47 = vadd.f32 %v1121_v38, %v335_v45  ;;  %v464_v48 = vadd.f32 %v1121_v38, %v463_v46  ;;  %v815_v49 = vpop.f32.mrb[18].mxu0  ;;  %v847_v50 = vpop.f32.mrb[18].mxu1 }
 0x100   :  { %v544_v51 = vmax.f32 %v344_v43, 0.0  ;;  %v576_v52 = vmax.f32 %v472_v44, 0.0  ;;  %v347_v53 = vadd.f32 %v815_v49, %v1121_v38  ;;  %v475_v54 = vadd.f32 %v847_v50, %v1121_v38  ;;  %v338_v55 = vpop.f32.mrb[19].mxu0  ;;  %v466_v56 = vpop.f32.mrb[19].mxu1 }
 0x101   :  { %v542_v57 = vmax.f32 %v336_v47, 0.0  ;;  %v574_v58 = vmax.f32 %v464_v48, 0.0  ;;  %v339_v59 = vadd.f32 %v1121_v38, %v338_v55  ;;  %v467_v60 = vadd.f32 %v1121_v38, %v466_v56 }
 0x102   :  { %v608_v61 = vmin.f32 %v544_v51, 6.0  ;;  %v640_v62 = vmin.f32 %v576_v52, 6.0  ;;  %v545_v63 = vmax.f32 %v347_v53, 0.0  ;;  %v577_v0 = vmax.f32 %v475_v54, 0.0 }
 0x103   :  { %v606_v1 = vmin.f32 %v542_v57, 6.0  ;;  %v638_v2 = vmin.f32 %v574_v58, 6.0  ;;  %v543_v3 = vmax.f32 %v339_v59, 0.0  ;;  %v575_v4 = vmax.f32 %v467_v60, 0.0 }
 0x104   :  { %673 = vst.msk [vmem:[%s1446_s3 + $0x90] sm:$0xff] %vm654_vm3, %v608_v61  ;;  %705 = vst.msk [vmem:[%s1446_s3 + $0x190] sm:$0xff] %vm654_vm3, %v640_v62  ;;  %v609_v5 = vmin.f32 %v545_v63, 6.0  ;;  %v641_v6 = vmin.f32 %v577_v0, 6.0 }
 0x105   :  { %671 = vst.msk [vmem:[%s1446_s3 + $0x80] sm:$0xff] %vm654_vm3, %v606_v1  ;;  %703 = vst.msk [vmem:[%s1446_s3 + $0x180] sm:$0xff] %vm654_vm3, %v638_v2  ;;  %v607_v7 = vmin.f32 %v543_v3, 6.0  ;;  %v639_v8 = vmin.f32 %v575_v4, 6.0  ;;  %v818_v9 = vpop.f32.mrb[20].mxu0  ;;  %v850_v10 = vpop.f32.mrb[20].mxu1 }
 0x106   :  { %674 = vst.msk [vmem:[%s1446_s3 + $0x98] sm:$0xff] %vm654_vm3, %v609_v5  ;;  %706 = vst.msk [vmem:[%s1446_s3 + $0x198] sm:$0xff] %vm654_vm3, %v641_v6  ;;  %v360_v11 = vadd.f32 %v818_v9, %v1121_v38  ;;  %v488_v12 = vadd.f32 %v850_v10, %v1121_v38  ;;  %v351_v13 = vpop.f32.mrb[21].mxu0  ;;  %v479_v14 = vpop.f32.mrb[21].mxu1 }
 0x107   :  { %672 = vst.msk [vmem:[%s1446_s3 + $0x88] sm:$0xff] %vm654_vm3, %v607_v7  ;;  %704 = vst.msk [vmem:[%s1446_s3 + $0x188] sm:$0xff] %vm654_vm3, %v639_v8  ;;  %v352_v15 = vadd.f32 %v1121_v38, %v351_v13  ;;  %v480_v16 = vadd.f32 %v1121_v38, %v479_v14  ;;  %v819_v17 = vpop.f32.mrb[22].mxu0  ;;  %v851_v18 = vpop.f32.mrb[22].mxu1 }
 0x108   :  { %v548_v19 = vmax.f32 %v360_v11, 0.0  ;;  %v580_v20 = vmax.f32 %v488_v12, 0.0  ;;  %v363_v21 = vadd.f32 %v819_v17, %v1121_v38  ;;  %v491_v22 = vadd.f32 %v851_v18, %v1121_v38  ;;  %v354_v23 = vpop.f32.mrb[23].mxu0  ;;  %v482_v24 = vpop.f32.mrb[23].mxu1 }
 0x109   :  { %v546_v25 = vmax.f32 %v352_v15, 0.0  ;;  %v578_v26 = vmax.f32 %v480_v16, 0.0  ;;  %v355_v27 = vadd.f32 %v1121_v38, %v354_v23  ;;  %v483_v28 = vadd.f32 %v1121_v38, %v482_v24 }
 0x10a   :  { %v612_v29 = vmin.f32 %v548_v19, 6.0  ;;  %v644_v30 = vmin.f32 %v580_v20, 6.0  ;;  %v549_v31 = vmax.f32 %v363_v21, 0.0  ;;  %v581_v32 = vmax.f32 %v491_v22, 0.0 }
 0x10b   :  { %v610_v33 = vmin.f32 %v546_v25, 6.0  ;;  %v642_v34 = vmin.f32 %v578_v26, 6.0  ;;  %v547_v35 = vmax.f32 %v355_v27, 0.0  ;;  %v579_v36 = vmax.f32 %v483_v28, 0.0 }
 0x10c   :  { %677 = vst.msk [vmem:[%s1446_s3 + $0xb0] sm:$0xff] %vm654_vm3, %v612_v29  ;;  %709 = vst.msk [vmem:[%s1446_s3 + $0x1b0] sm:$0xff] %vm654_vm3, %v644_v30  ;;  %v613_v37 = vmin.f32 %v549_v31, 6.0  ;;  %v645_v39 = vmin.f32 %v581_v32, 6.0 }
 0x10d   :  { %675 = vst.msk [vmem:[%s1446_s3 + $0xa0] sm:$0xff] %vm654_vm3, %v610_v33  ;;  %707 = vst.msk [vmem:[%s1446_s3 + $0x1a0] sm:$0xff] %vm654_vm3, %v642_v34  ;;  %v611_v40 = vmin.f32 %v547_v35, 6.0  ;;  %v643_v41 = vmin.f32 %v579_v36, 6.0  ;;  %v822_v42 = vpop.f32.mrb[24].mxu0  ;;  %v854_v43 = vpop.f32.mrb[24].mxu1 }
 0x10e   :  { %678 = vst.msk [vmem:[%s1446_s3 + $0xb8] sm:$0xff] %vm654_vm3, %v613_v37  ;;  %710 = vst.msk [vmem:[%s1446_s3 + $0x1b8] sm:$0xff] %vm654_vm3, %v645_v39  ;;  %v376_v44 = vadd.f32 %v822_v42, %v1121_v38  ;;  %v504_v45 = vadd.f32 %v854_v43, %v1121_v38  ;;  %v367_v46 = vpop.f32.mrb[25].mxu0  ;;  %v495_v47 = vpop.f32.mrb[25].mxu1 }
 0x10f   :  { %676 = vst.msk [vmem:[%s1446_s3 + $0xa8] sm:$0xff] %vm654_vm3, %v611_v40  ;;  %708 = vst.msk [vmem:[%s1446_s3 + $0x1a8] sm:$0xff] %vm654_vm3, %v643_v41  ;;  %v368_v48 = vadd.f32 %v1121_v38, %v367_v46  ;;  %v496_v49 = vadd.f32 %v1121_v38, %v495_v47  ;;  %v823_v50 = vpop.f32.mrb[26].mxu0  ;;  %v855_v51 = vpop.f32.mrb[26].mxu1 }
 0x110   :  { %v552_v52 = vmax.f32 %v376_v44, 0.0  ;;  %v584_v53 = vmax.f32 %v504_v45, 0.0  ;;  %v379_v54 = vadd.f32 %v823_v50, %v1121_v38  ;;  %v507_v55 = vadd.f32 %v855_v51, %v1121_v38  ;;  %v370_v56 = vpop.f32.mrb[27].mxu0  ;;  %v498_v57 = vpop.f32.mrb[27].mxu1 }
 0x111   :  { %v550_v58 = vmax.f32 %v368_v48, 0.0  ;;  %v582_v59 = vmax.f32 %v496_v49, 0.0  ;;  %v371_v60 = vadd.f32 %v1121_v38, %v370_v56  ;;  %v499_v61 = vadd.f32 %v1121_v38, %v498_v57 }
 0x112   :  { %v616_v62 = vmin.f32 %v552_v52, 6.0  ;;  %v648_v63 = vmin.f32 %v584_v53, 6.0  ;;  %v553_v0 = vmax.f32 %v379_v54, 0.0  ;;  %v585_v1 = vmax.f32 %v507_v55, 0.0 }
 0x113   :  { %v614_v2 = vmin.f32 %v550_v58, 6.0  ;;  %v646_v3 = vmin.f32 %v582_v59, 6.0  ;;  %v551_v4 = vmax.f32 %v371_v60, 0.0  ;;  %v583_v5 = vmax.f32 %v499_v61, 0.0 }
 0x114   :  { %681 = vst.msk [vmem:[%s1446_s3 + $0xd0] sm:$0xff] %vm654_vm3, %v616_v62  ;;  %713 = vst.msk [vmem:[%s1446_s3 + $0x1d0] sm:$0xff] %vm654_vm3, %v648_v63  ;;  %v617_v6 = vmin.f32 %v553_v0, 6.0  ;;  %v649_v7 = vmin.f32 %v585_v1, 6.0 }
 0x115   :  { %679 = vst.msk [vmem:[%s1446_s3 + $0xc0] sm:$0xff] %vm654_vm3, %v614_v2  ;;  %711 = vst.msk [vmem:[%s1446_s3 + $0x1c0] sm:$0xff] %vm654_vm3, %v646_v3  ;;  %v615_v8 = vmin.f32 %v551_v4, 6.0  ;;  %v647_v9 = vmin.f32 %v583_v5, 6.0  ;;  %v826_v10 = vpop.f32.mrb[28].mxu0  ;;  %v858_v11 = vpop.f32.mrb[28].mxu1 }
 0x116   :  { %682 = vst.msk [vmem:[%s1446_s3 + $0xd8] sm:$0xff] %vm654_vm3, %v617_v6  ;;  %714 = vst.msk [vmem:[%s1446_s3 + $0x1d8] sm:$0xff] %vm654_vm3, %v649_v7  ;;  %v392_v12 = vadd.f32 %v826_v10, %v1121_v38  ;;  %v520_v13 = vadd.f32 %v858_v11, %v1121_v38  ;;  %v383_v14 = vpop.f32.mrb[29].mxu0  ;;  %v511_v15 = vpop.f32.mrb[29].mxu1 }
 0x117   :  { %680 = vst.msk [vmem:[%s1446_s3 + $0xc8] sm:$0xff] %vm654_vm3, %v615_v8  ;;  %712 = vst.msk [vmem:[%s1446_s3 + $0x1c8] sm:$0xff] %vm654_vm3, %v647_v9  ;;  %v384_v16 = vadd.f32 %v1121_v38, %v383_v14  ;;  %v512_v17 = vadd.f32 %v1121_v38, %v511_v15  ;;  %v827_v18 = vpop.f32.mrb[30].mxu0  ;;  %v859_v19 = vpop.f32.mrb[30].mxu1 }
 0x118   :  { %v556_v20 = vmax.f32 %v392_v12, 0.0  ;;  %v588_v21 = vmax.f32 %v520_v13, 0.0  ;;  %v395_v22 = vadd.f32 %v827_v18, %v1121_v38  ;;  %v523_v23 = vadd.f32 %v859_v19, %v1121_v38  ;;  %v386_v24 = vpop.f32.mrb[31].mxu0  ;;  %v514_v25 = vpop.f32.mrb[31].mxu1 }
 0x119   :  { %v554_v26 = vmax.f32 %v384_v16, 0.0  ;;  %v586_v27 = vmax.f32 %v512_v17, 0.0  ;;  %v387_v28 = vadd.f32 %v1121_v38, %v386_v24  ;;  %v515_v29 = vadd.f32 %v1121_v38, %v514_v25 }
 0x11a   :  { %v620_v30 = vmin.f32 %v556_v20, 6.0  ;;  %v652_v31 = vmin.f32 %v588_v21, 6.0  ;;  %v557_v32 = vmax.f32 %v395_v22, 0.0  ;;  %v589_v33 = vmax.f32 %v523_v23, 0.0 }
 0x11b   :  { %v618_v34 = vmin.f32 %v554_v26, 6.0  ;;  %v650_v35 = vmin.f32 %v586_v27, 6.0  ;;  %v555_v36 = vmax.f32 %v387_v28, 0.0  ;;  %v587_v37 = vmax.f32 %v515_v29, 0.0 }
 0x11c   :  { %685 = vst.msk [vmem:[%s1446_s3 + $0xf0] sm:$0xff] %vm654_vm3, %v620_v30  ;;  %717 = vst.msk [vmem:[%s1446_s3 + $0x1f0] sm:$0xff] %vm654_vm3, %v652_v31  ;;  %v621_v39 = vmin.f32 %v557_v32, 6.0  ;;  %v653_v38 = vmin.f32 %v589_v33, 6.0 }
 0x11d   :  { %683 = vst.msk [vmem:[%s1446_s3 + $0xe0] sm:$0xff] %vm654_vm3, %v618_v34  ;;  %715 = vst.msk [vmem:[%s1446_s3 + $0x1e0] sm:$0xff] %vm654_vm3, %v650_v35  ;;  %v619_v40 = vmin.f32 %v555_v36, 6.0  ;;  %v651_v41 = vmin.f32 %v587_v37, 6.0 }
 0x11e   :  { %686 = vst.msk [vmem:[%s1446_s3 + $0xf8] sm:$0xff] %vm654_vm3, %v621_v39  ;;  %718 = vst.msk [vmem:[%s1446_s3 + $0x1f8] sm:$0xff] %vm654_vm3, %v653_v38 }
 0x11f   :  { %684 = vst.msk [vmem:[%s1446_s3 + $0xe8] sm:$0xff] %vm654_vm3, %v619_v40  ;;  %716 = vst.msk [vmem:[%s1446_s3 + $0x1e8] sm:$0xff] %vm654_vm3, %v651_v41 }

</bundles_post_ra>
